<compile_context>
chip_gen: v5e
topology: v5e:2x2
jax: 0.10.0
libtpu: 0.0.40
codegen_flags: <defaults>
</compile_context>

<pallas_src>
import jax
import jax.numpy as jnp
from jax.experimental import pallas as pl
from jax.experimental.pallas import tpu as pltpu


def decoder_step_kernel(
    ids_ref,        # (B, 1)   int32 token ids
    ctx_in_ref,     # (B, H)   last_context
    h_ref,          # (B, H)   last_hidden[0]
    enc_ref,        # (B, S, H) encoder outputs, batch-first
    emb_ref,        # (V, E)   embedding table
    w_ie_ref,       # (E, 3*Hp) fused input-path gate weights (embedding rows)
    w_ic_ref,       # (H, 3*Hp) fused input-path gate weights (context rows)
    w_h_ref,        # (H, 3*Hp) fused hidden-path gate weights
    b_i_ref,        # (1, 3*Hp) fused input biases
    b_h_ref,        # (1, 3*Hp) fused hidden biases
    w_attn_v_ref,   # (H, H)   == W_attn^T, so v = h_new @ w_attn_v
    b_attn_ref,     # (1, H)
    w_out_ref,      # (2H, V)  rows 0:H -> h_new path, H:2H -> context path
    b_out_ref,      # (1, V)
    out_ref,        # (B, V)   log-softmax output
    ctx_out_ref,    # (B, H)   new context
    hid_ref,        # (B, H)   new hidden
    aw_ref,         # (B, S)   attention weights (lane-dense layout)
):
    B, S, H = enc_ref.shape
    Hp = w_h_ref.shape[1] // 3
    V, E = emb_ref.shape

    # ---------------- embedding lookup inside the kernel: one_hot(ids) @ table (MXU) -----
    ids = ids_ref[...]                                            # (B, 1) int32
    iota_v = jax.lax.broadcasted_iota(jnp.int32, (B, V), 1)
    onehot = (iota_v == ids).astype(jnp.float32)                  # (B, V)
    emb = jnp.dot(onehot, emb_ref[...],
                  preferred_element_type=jnp.float32)             # (B, E)

    ctx_in = ctx_in_ref[...]                                      # (B, H)
    h = h_ref[...]                                                # (B, H)

    # ---------------- fused GRU cell (PyTorch gate order r, z, n) ------------------------
    # gx == [emb | last_context] @ W_i + b_i, expressed as sum of row-split matmuls.
    gx = (jnp.dot(emb, w_ie_ref[...], preferred_element_type=jnp.float32)
          + jnp.dot(ctx_in, w_ic_ref[...], preferred_element_type=jnp.float32)
          + b_i_ref[...])                                         # (B, 3*Hp)
    gh = (jnp.dot(h, w_h_ref[...], preferred_element_type=jnp.float32)
          + b_h_ref[...])                                         # (B, 3*Hp)

    # Gate blocks start at 128-aligned lane offsets 0, Hp, 2*Hp (no cross-lane rotates).
    r = jax.nn.sigmoid(gx[:, 0:H] + gh[:, 0:H])
    z = jax.nn.sigmoid(gx[:, Hp:Hp + H] + gh[:, Hp:Hp + H])
    n = jnp.tanh(gx[:, 2 * Hp:2 * Hp + H] + r * gh[:, 2 * Hp:2 * Hp + H])
    h_new = (1.0 - z) * n + z * h                                 # (B, H) == rnn_output
    hid_ref[...] = h_new

    # ---------------- Attn('general'), algebraically refactored --------------------------
    # sum_h h_new*(enc@W_a + b_a)  ==  enc . (h_new @ W_a^T)  +  h_new . b_a
    v = jnp.dot(h_new, w_attn_v_ref[...],
                preferred_element_type=jnp.float32)               # (B, H)
    bias_term = jnp.sum(h_new * b_attn_ref[...], axis=1, keepdims=True)   # (B, 1)

    enc = enc_ref[...]                                            # (B, S, H)
    attn_e = jnp.sum(enc * v[:, None, :], axis=2) + bias_term     # (B, S)

    # softmax over the seq dim (== F.softmax(attn_energies, dim=0)); lane-direction reduce.
    m = jnp.max(attn_e, axis=1, keepdims=True)
    e = jnp.exp(attn_e - m)
    aw = e / jnp.sum(e, axis=1, keepdims=True)                    # (B, S)
    aw_ref[...] = aw

    # context = bmm(attn_weights (B,1,S), enc (B,S,H)).squeeze(1)
    context = jnp.sum(aw[:, :, None] * enc, axis=1)               # (B, H)
    ctx_out_ref[...] = context

    # ---------------- output = log_softmax(Linear(cat(rnn_output, context))) -------------
    logits = (jnp.dot(h_new, w_out_ref[0:H, :], preferred_element_type=jnp.float32)
              + jnp.dot(context, w_out_ref[H:2 * H, :], preferred_element_type=jnp.float32)
              + b_out_ref[...])                                   # (B, V)
    lm = jnp.max(logits, axis=1, keepdims=True)
    sh = logits - lm
    lse = jnp.log(jnp.sum(jnp.exp(sh), axis=1, keepdims=True))
    out_ref[...] = sh - lse


def pack_params(params, emb_dim, hidden_size):
    """One-time weight packing (would be hoisted out of any decode loop)."""
    E, H = emb_dim, hidden_size
    Hp = ((H + 127) // 128) * 128

    def pad_cols(w):                       # (in, H) -> (in, Hp), zero pad lanes
        return jnp.pad(w, ((0, 0), (0, Hp - H)))

    w_i = jnp.concatenate(
        [pad_cols(params["w_ir"]), pad_cols(params["w_iz"]), pad_cols(params["w_in"])],
        axis=1)                            # (E+H, 3*Hp)
    w_h = jnp.concatenate(
        [pad_cols(params["w_hr"]), pad_cols(params["w_hz"]), pad_cols(params["w_hn"])],
        axis=1)                            # (H, 3*Hp)
    b_i = jnp.concatenate(
        [pad_cols(params["b_ir"]), pad_cols(params["b_iz"]), pad_cols(params["b_in"])],
        axis=1)                            # (1, 3*Hp)
    b_h = jnp.concatenate(
        [pad_cols(params["b_hr"]), pad_cols(params["b_hz"]), pad_cols(params["b_hn"])],
        axis=1)                            # (1, 3*Hp)

    return {
        "embedding": params["embedding"],            # (V, E)
        "w_ie": w_i[:E],                             # (E, 3*Hp)
        "w_ic": w_i[E:],                             # (H, 3*Hp)
        "w_h": w_h,                                  # (H, 3*Hp)
        "b_i": b_i,
        "b_h": b_h,
        "w_attn_v": params["w_attn"].T,              # (H, H)
        "b_attn": params["b_attn"],                  # (1, H)
        "w_out": jnp.concatenate([params["w_out_h"], params["w_out_c"]], axis=0),  # (2H, V)
        "b_out": params["b_out"],                    # (1, V)
    }


def decoder_forward(packed, token_input, last_context, last_hidden, encoder_outputs):
    """Mirrors Decoder.forward. Returns (output, context, hidden, attn_weights)."""
    S, B, H = encoder_outputs.shape
    V, E = packed["embedding"].shape

    ids = token_input.reshape(B, 1).astype(jnp.int32)
    # (S,B,H) -> (B,S,H); in a real decode loop this transpose is hoisted out of the loop.
    enc_bsh = jnp.transpose(encoder_outputs, (1, 0, 2))
    h0 = last_hidden[0]                                 # (B, H), n_layers = 1

    vmem = pl.BlockSpec(memory_space=pltpu.MemorySpace.VMEM)
    out, ctx, h_new, aw = pl.pallas_call(
        decoder_step_kernel,
        out_shape=(
            jax.ShapeDtypeStruct((B, V), jnp.float32),  # log_softmax output
            jax.ShapeDtypeStruct((B, H), jnp.float32),  # context
            jax.ShapeDtypeStruct((B, H), jnp.float32),  # new hidden
            jax.ShapeDtypeStruct((B, S), jnp.float32),  # attention weights (batch-first)
        ),
        in_specs=[vmem] * 14,
        out_specs=(vmem, vmem, vmem, vmem),
    )(
        ids, last_context, h0, enc_bsh,
        packed["embedding"],
        packed["w_ie"], packed["w_ic"], packed["w_h"],
        packed["b_i"], packed["b_h"],
        packed["w_attn_v"], packed["b_attn"],
        packed["w_out"], packed["b_out"],
    )
    hidden = h_new[None]                 # (1, B, H)
    attn_weights = aw[:, None, :]        # (B, 1, S) == .transpose(0,1).unsqueeze(1)
    return out, ctx, hidden, attn_weights


def reference_forward(params, token_input, last_context, last_hidden, encoder_outputs):
    """Pure-JAX reference replicating the PyTorch forward (unpacked params)."""
    emb = params["embedding"][token_input[0]]
    x = jnp.concatenate([emb, last_context], axis=1)
    h = last_hidden[0]
    r = jax.nn.sigmoid(x @ params["w_ir"] + params["b_ir"] + h @ params["w_hr"] + params["b_hr"])
    z = jax.nn.sigmoid(x @ params["w_iz"] + params["b_iz"] + h @ params["w_hz"] + params["b_hz"])
    n = jnp.tanh(x @ params["w_in"] + params["b_in"]
                 + r * (h @ params["w_hn"] + params["b_hn"]))
    h_new = (1.0 - z) * n + z * h
    energy = encoder_outputs @ params["w_attn"] + params["b_attn"]
    attn_e = jnp.sum(h_new[None] * energy, axis=2)
    aw = jax.nn.softmax(attn_e, axis=0)
    context = jnp.einsum("sb,sbh->bh", aw, encoder_outputs)
    logits = h_new @ params["w_out_h"] + context @ params["w_out_c"] + params["b_out"]
    out = jax.nn.log_softmax(logits, axis=1)
    return out, context, h_new[None], aw.T[:, None, :]


def init_params(key, emb_dim, hidden_size, output_size):
    names_shapes = {
        "embedding": (output_size, emb_dim),
        "w_ir": (emb_dim + hidden_size, hidden_size),
        "w_iz": (emb_dim + hidden_size, hidden_size),
        "w_in": (emb_dim + hidden_size, hidden_size),
        "w_hr": (hidden_size, hidden_size),
        "w_hz": (hidden_size, hidden_size),
        "w_hn": (hidden_size, hidden_size),
        "b_ir": (1, hidden_size),
        "b_iz": (1, hidden_size),
        "b_in": (1, hidden_size),
        "b_hr": (1, hidden_size),
        "b_hz": (1, hidden_size),
        "b_hn": (1, hidden_size),
        "w_attn": (hidden_size, hidden_size),
        "b_attn": (1, hidden_size),
        "w_out_h": (hidden_size, output_size),
        "w_out_c": (hidden_size, output_size),
        "b_out": (1, output_size),
    }
    params = {}
    keys = jax.random.split(key, len(names_shapes))
    for k, (name, shape) in zip(keys, names_shapes.items()):
        params[name] = (0.1 * jax.random.normal(k, shape)).astype(jnp.float32)
    return params


if __name__ == "__main__":
    B, S, E, H, V = 2, 8, 16, 32, 24        # batch, src seq len, emb_dim, hidden, output_size

    key = jax.random.PRNGKey(0)
    kp, kt, kc, kh, ke = jax.random.split(key, 5)

    params = init_params(kp, E, H, V)
    packed = pack_params(params, E, H)       # one-time packing (outside the decode loop)

    token_input = jax.random.randint(kt, (1, B), 0, V, dtype=jnp.int32)
    last_context = (0.1 * jax.random.normal(kc, (B, H))).astype(jnp.float32)
    last_hidden = (0.1 * jax.random.normal(kh, (1, B, H))).astype(jnp.float32)
    encoder_outputs = (0.1 * jax.random.normal(ke, (S, B, H))).astype(jnp.float32)

    out, ctx, hidden, aw = decoder_forward(
        packed, token_input, last_context, last_hidden, encoder_outputs)
    jax.block_until_ready((out, ctx, hidden, aw))

    r_out, r_ctx, r_hidden, r_aw = reference_forward(
        params, token_input, last_context, last_hidden, encoder_outputs)
    assert out.shape == (B, V) and ctx.shape == (B, H)
    assert hidden.shape == (1, B, H) and aw.shape == (B, 1, S)
    for a, b in ((out, r_out), (ctx, r_ctx), (hidden, r_hidden), (aw, r_aw)):
        assert jnp.allclose(a, b, atol=1e-4, rtol=1e-4), "mismatch vs JAX reference"

    # TODO(synk): GRU dropout is a no-op here (n_layers=1; PyTorch applies it only between
    # stacked GRU layers), so it is intentionally not modeled.
    print("KERNEL_OK")
</pallas_src>

<mosaic_0001>
module attributes {stable_mosaic.version = 11 : i64} {
  func.func @decoder_step_kernel(%arg0: memref<2x1xi32, #tpu.memory_space<vmem>>, %arg1: memref<2x32xf32, #tpu.memory_space<vmem>>, %arg2: memref<2x32xf32, #tpu.memory_space<vmem>>, %arg3: memref<2x8x32xf32, #tpu.memory_space<vmem>>, %arg4: memref<24x16xf32, #tpu.memory_space<vmem>>, %arg5: memref<16x384xf32, #tpu.memory_space<vmem>>, %arg6: memref<32x384xf32, #tpu.memory_space<vmem>>, %arg7: memref<32x384xf32, #tpu.memory_space<vmem>>, %arg8: memref<1x384xf32, #tpu.memory_space<vmem>>, %arg9: memref<1x384xf32, #tpu.memory_space<vmem>>, %arg10: memref<32x32xf32, #tpu.memory_space<vmem>>, %arg11: memref<1x32xf32, #tpu.memory_space<vmem>>, %arg12: memref<64x24xf32, #tpu.memory_space<vmem>>, %arg13: memref<1x24xf32, #tpu.memory_space<vmem>>, %arg14: memref<2x24xf32, #tpu.memory_space<vmem>>, %arg15: memref<2x32xf32, #tpu.memory_space<vmem>>, %arg16: memref<2x32xf32, #tpu.memory_space<vmem>>, %arg17: memref<2x8xf32, #tpu.memory_space<vmem>>) attributes {dimension_semantics = [], scalar_prefetch = 0 : i64, scratch_operands = 0 : i64, tpu.core_type = #tpu.core_type<tc>} {
    %c0 = arith.constant 0 : index
    %c0_0 = arith.constant 0 : index
    %0 = vector.load %arg0[%c0, %c0_0] : memref<2x1xi32, #tpu.memory_space<vmem>>, vector<2x1xi32>
    %1 = tpu.iota {dimensions = array<i32: 1>} : vector<2x24xi32>
    %2 = vector.broadcast %0 : vector<2x1xi32> to vector<2x24xi32>
    %3 = arith.cmpi eq, %1, %2 : vector<2x24xi32>
    %4 = arith.extui %3 : vector<2x24xi1> to vector<2x24xi32>
    %5 = arith.sitofp %4 : vector<2x24xi32> to vector<2x24xf32>
    %c0_1 = arith.constant 0 : index
    %c0_2 = arith.constant 0 : index
    %6 = vector.load %arg4[%c0_1, %c0_2] : memref<24x16xf32, #tpu.memory_space<vmem>>, vector<24x16xf32>
    %cst = arith.constant dense<0.000000e+00> : vector<2x16xf32>
    %7 = tpu.matmul %5, %6, %cst {dimension_numbers = #tpu.dot_dimension_numbers<[1], [0], [0], [1], [0, 0, 1, 1], [], []>} : vector<2x24xf32>, vector<24x16xf32>, vector<2x16xf32> -> vector<2x16xf32>
    %c0_3 = arith.constant 0 : index
    %c0_4 = arith.constant 0 : index
    %8 = vector.load %arg1[%c0_3, %c0_4] : memref<2x32xf32, #tpu.memory_space<vmem>>, vector<2x32xf32>
    %c0_5 = arith.constant 0 : index
    %c0_6 = arith.constant 0 : index
    %9 = vector.load %arg2[%c0_5, %c0_6] : memref<2x32xf32, #tpu.memory_space<vmem>>, vector<2x32xf32>
    %c0_7 = arith.constant 0 : index
    %c0_8 = arith.constant 0 : index
    %10 = vector.load %arg5[%c0_7, %c0_8] : memref<16x384xf32, #tpu.memory_space<vmem>>, vector<16x384xf32>
    %cst_9 = arith.constant dense<0.000000e+00> : vector<2x384xf32>
    %11 = tpu.matmul %7, %10, %cst_9 {dimension_numbers = #tpu.dot_dimension_numbers<[1], [0], [0], [1], [0, 0, 1, 1], [], []>} : vector<2x16xf32>, vector<16x384xf32>, vector<2x384xf32> -> vector<2x384xf32>
    %c0_10 = arith.constant 0 : index
    %c0_11 = arith.constant 0 : index
    %12 = vector.load %arg6[%c0_10, %c0_11] : memref<32x384xf32, #tpu.memory_space<vmem>>, vector<32x384xf32>
    %cst_12 = arith.constant dense<0.000000e+00> : vector<2x384xf32>
    %13 = tpu.matmul %8, %12, %cst_12 {dimension_numbers = #tpu.dot_dimension_numbers<[1], [0], [0], [1], [0, 0, 1, 1], [], []>} : vector<2x32xf32>, vector<32x384xf32>, vector<2x384xf32> -> vector<2x384xf32>
    %14 = arith.addf %11, %13 : vector<2x384xf32>
    %c0_13 = arith.constant 0 : index
    %c0_14 = arith.constant 0 : index
    %15 = vector.load %arg8[%c0_13, %c0_14] : memref<1x384xf32, #tpu.memory_space<vmem>>, vector<1x384xf32>
    %16 = vector.broadcast %15 : vector<1x384xf32> to vector<2x384xf32>
    %17 = arith.addf %14, %16 : vector<2x384xf32>
    %c0_15 = arith.constant 0 : index
    %c0_16 = arith.constant 0 : index
    %18 = vector.load %arg7[%c0_15, %c0_16] : memref<32x384xf32, #tpu.memory_space<vmem>>, vector<32x384xf32>
    %cst_17 = arith.constant dense<0.000000e+00> : vector<2x384xf32>
    %19 = tpu.matmul %9, %18, %cst_17 {dimension_numbers = #tpu.dot_dimension_numbers<[1], [0], [0], [1], [0, 0, 1, 1], [], []>} : vector<2x32xf32>, vector<32x384xf32>, vector<2x384xf32> -> vector<2x384xf32>
    %c0_18 = arith.constant 0 : index
    %c0_19 = arith.constant 0 : index
    %20 = vector.load %arg9[%c0_18, %c0_19] : memref<1x384xf32, #tpu.memory_space<vmem>>, vector<1x384xf32>
    %21 = vector.broadcast %20 : vector<1x384xf32> to vector<2x384xf32>
    %22 = arith.addf %19, %21 : vector<2x384xf32>
    %23 = vector.extract_strided_slice %17 {offsets = [0, 0], sizes = [2, 32], strides = [1, 1]} : vector<2x384xf32> to vector<2x32xf32>
    %24 = vector.extract_strided_slice %22 {offsets = [0, 0], sizes = [2, 32], strides = [1, 1]} : vector<2x384xf32> to vector<2x32xf32>
    %25 = arith.addf %23, %24 : vector<2x32xf32>
    %26 = arith.negf %25 : vector<2x32xf32>
    %27 = math.exp %26 : vector<2x32xf32>
    %cst_20 = arith.constant 1.000000e+00 : f32
    %28 = vector.broadcast %cst_20 : f32 to vector<2x32xf32>
    %29 = arith.addf %28, %27 : vector<2x32xf32>
    %30 = arith.divf %28, %29 : vector<2x32xf32>
    %31 = vector.extract_strided_slice %17 {offsets = [0, 128], sizes = [2, 32], strides = [1, 1]} : vector<2x384xf32> to vector<2x32xf32>
    %32 = vector.extract_strided_slice %22 {offsets = [0, 128], sizes = [2, 32], strides = [1, 1]} : vector<2x384xf32> to vector<2x32xf32>
    %33 = arith.addf %31, %32 : vector<2x32xf32>
    %34 = arith.negf %33 : vector<2x32xf32>
    %35 = math.exp %34 : vector<2x32xf32>
    %cst_21 = arith.constant 1.000000e+00 : f32
    %36 = vector.broadcast %cst_21 : f32 to vector<2x32xf32>
    %37 = arith.addf %36, %35 : vector<2x32xf32>
    %38 = arith.divf %36, %37 : vector<2x32xf32>
    %39 = vector.extract_strided_slice %17 {offsets = [0, 256], sizes = [2, 32], strides = [1, 1]} : vector<2x384xf32> to vector<2x32xf32>
    %40 = vector.extract_strided_slice %22 {offsets = [0, 256], sizes = [2, 32], strides = [1, 1]} : vector<2x384xf32> to vector<2x32xf32>
    %41 = arith.mulf %30, %40 : vector<2x32xf32>
    %42 = arith.addf %39, %41 : vector<2x32xf32>
    %43 = math.tanh %42 : vector<2x32xf32>
    %cst_22 = arith.constant 1.000000e+00 : f32
    %44 = vector.broadcast %cst_22 : f32 to vector<2x32xf32>
    %45 = arith.subf %44, %38 : vector<2x32xf32>
    %46 = arith.mulf %45, %43 : vector<2x32xf32>
    %47 = arith.mulf %38, %9 : vector<2x32xf32>
    %48 = arith.addf %46, %47 : vector<2x32xf32>
    %c0_23 = arith.constant 0 : index
    %c0_24 = arith.constant 0 : index
    %49 = vector.load %arg16[%c0_23, %c0_24] : memref<2x32xf32, #tpu.memory_space<vmem>>, vector<2x32xf32>
    tpu.vector_store %arg16[%c0_23, %c0_24], %48 {strides = array<i32>} : memref<2x32xf32, #tpu.memory_space<vmem>>, vector<2x32xf32>,
    %c0_25 = arith.constant 0 : index
    %c0_26 = arith.constant 0 : index
    %50 = vector.load %arg10[%c0_25, %c0_26] : memref<32x32xf32, #tpu.memory_space<vmem>>, vector<32x32xf32>
    %cst_27 = arith.constant dense<0.000000e+00> : vector<2x32xf32>
    %51 = tpu.matmul %48, %50, %cst_27 {dimension_numbers = #tpu.dot_dimension_numbers<[1], [0], [0], [1], [0, 0, 1, 1], [], []>} : vector<2x32xf32>, vector<32x32xf32>, vector<2x32xf32> -> vector<2x32xf32>
    %c0_28 = arith.constant 0 : index
    %c0_29 = arith.constant 0 : index
    %52 = vector.load %arg11[%c0_28, %c0_29] : memref<1x32xf32, #tpu.memory_space<vmem>>, vector<1x32xf32>
    %53 = vector.broadcast %52 : vector<1x32xf32> to vector<2x32xf32>
    %54 = arith.mulf %48, %53 : vector<2x32xf32>
    %cst_30 = arith.constant dense<0.000000e+00> : vector<2xf32>
    %55 = vector.multi_reduction <add>, %54, %cst_30 [1] : vector<2x32xf32> to vector<2xf32>
    %56 = vector.shape_cast %55 : vector<2xf32> to vector<2x1xf32>
    %c0_31 = arith.constant 0 : index
    %c0_32 = arith.constant 0 : index
    %c0_33 = arith.constant 0 : index
    %57 = vector.load %arg3[%c0_31, %c0_32, %c0_33] : memref<2x8x32xf32, #tpu.memory_space<vmem>>, vector<2x8x32xf32>
    %58 = vector.shape_cast %51 : vector<2x32xf32> to vector<2x1x32xf32>
    %59 = vector.broadcast %58 : vector<2x1x32xf32> to vector<2x8x32xf32>
    %60 = arith.mulf %57, %59 : vector<2x8x32xf32>
    %cst_34 = arith.constant dense<0.000000e+00> : vector<2x8xf32>
    %61 = vector.multi_reduction <add>, %60, %cst_34 [2] : vector<2x8x32xf32> to vector<2x8xf32>
    %62 = vector.broadcast %56 : vector<2x1xf32> to vector<2x8xf32>
    %63 = arith.addf %61, %62 : vector<2x8xf32>
    %cst_35 = arith.constant dense<0xFF800000> : vector<2xf32>
    %64 = vector.multi_reduction <maximumf>, %63, %cst_35 [1] : vector<2x8xf32> to vector<2xf32>
    %65 = vector.shape_cast %64 : vector<2xf32> to vector<2x1xf32>
    %66 = vector.broadcast %65 : vector<2x1xf32> to vector<2x8xf32>
    %67 = arith.subf %63, %66 : vector<2x8xf32>
    %68 = math.exp %67 : vector<2x8xf32>
    %cst_36 = arith.constant dense<0.000000e+00> : vector<2xf32>
    %69 = vector.multi_reduction <add>, %68, %cst_36 [1] : vector<2x8xf32> to vector<2xf32>
    %70 = vector.shape_cast %69 : vector<2xf32> to vector<2x1xf32>
    %71 = vector.broadcast %70 : vector<2x1xf32> to vector<2x8xf32>
    %72 = arith.divf %68, %71 : vector<2x8xf32>
    %c0_37 = arith.constant 0 : index
    %c0_38 = arith.constant 0 : index
    %73 = vector.load %arg17[%c0_37, %c0_38] : memref<2x8xf32, #tpu.memory_space<vmem>>, vector<2x8xf32>
    tpu.vector_store %arg17[%c0_37, %c0_38], %72 {strides = array<i32>} : memref<2x8xf32, #tpu.memory_space<vmem>>, vector<2x8xf32>,
    %74 = vector.shape_cast %72 : vector<2x8xf32> to vector<2x8x1xf32>
    %75 = vector.broadcast %74 : vector<2x8x1xf32> to vector<2x8x32xf32>
    %76 = arith.mulf %75, %57 : vector<2x8x32xf32>
    %cst_39 = arith.constant dense<0.000000e+00> : vector<2x32xf32>
    %77 = vector.multi_reduction <add>, %76, %cst_39 [1] : vector<2x8x32xf32> to vector<2x32xf32>
    %c0_40 = arith.constant 0 : index
    %c0_41 = arith.constant 0 : index
    %78 = vector.load %arg15[%c0_40, %c0_41] : memref<2x32xf32, #tpu.memory_space<vmem>>, vector<2x32xf32>
    tpu.vector_store %arg15[%c0_40, %c0_41], %77 {strides = array<i32>} : memref<2x32xf32, #tpu.memory_space<vmem>>, vector<2x32xf32>,
    %c0_42 = arith.constant 0 : index
    %c0_43 = arith.constant 0 : index
    %79 = vector.load %arg12[%c0_42, %c0_43] : memref<64x24xf32, #tpu.memory_space<vmem>>, vector<32x24xf32>
    %cst_44 = arith.constant dense<0.000000e+00> : vector<2x24xf32>
    %80 = tpu.matmul %48, %79, %cst_44 {dimension_numbers = #tpu.dot_dimension_numbers<[1], [0], [0], [1], [0, 0, 1, 1], [], []>} : vector<2x32xf32>, vector<32x24xf32>, vector<2x24xf32> -> vector<2x24xf32>
    %c32 = arith.constant 32 : index
    %c0_45 = arith.constant 0 : index
    %81 = vector.load %arg12[%c32, %c0_45] : memref<64x24xf32, #tpu.memory_space<vmem>>, vector<32x24xf32>
    %cst_46 = arith.constant dense<0.000000e+00> : vector<2x24xf32>
    %82 = tpu.matmul %77, %81, %cst_46 {dimension_numbers = #tpu.dot_dimension_numbers<[1], [0], [0], [1], [0, 0, 1, 1], [], []>} : vector<2x32xf32>, vector<32x24xf32>, vector<2x24xf32> -> vector<2x24xf32>
    %83 = arith.addf %80, %82 : vector<2x24xf32>
    %c0_47 = arith.constant 0 : index
    %c0_48 = arith.constant 0 : index
    %84 = vector.load %arg13[%c0_47, %c0_48] : memref<1x24xf32, #tpu.memory_space<vmem>>, vector<1x24xf32>
    %85 = vector.broadcast %84 : vector<1x24xf32> to vector<2x24xf32>
    %86 = arith.addf %83, %85 : vector<2x24xf32>
    %cst_49 = arith.constant dense<0xFF800000> : vector<2xf32>
    %87 = vector.multi_reduction <maximumf>, %86, %cst_49 [1] : vector<2x24xf32> to vector<2xf32>
    %88 = vector.shape_cast %87 : vector<2xf32> to vector<2x1xf32>
    %89 = vector.broadcast %88 : vector<2x1xf32> to vector<2x24xf32>
    %90 = arith.subf %86, %89 : vector<2x24xf32>
    %91 = math.exp %90 : vector<2x24xf32>
    %cst_50 = arith.constant dense<0.000000e+00> : vector<2xf32>
    %92 = vector.multi_reduction <add>, %91, %cst_50 [1] : vector<2x24xf32> to vector<2xf32>
    %93 = vector.shape_cast %92 : vector<2xf32> to vector<2x1xf32>
    %94 = math.log %93 : vector<2x1xf32>
    %95 = vector.broadcast %94 : vector<2x1xf32> to vector<2x24xf32>
    %96 = arith.subf %90, %95 : vector<2x24xf32>
    %c0_51 = arith.constant 0 : index
    %c0_52 = arith.constant 0 : index
    %97 = vector.load %arg14[%c0_51, %c0_52] : memref<2x24xf32, #tpu.memory_space<vmem>>, vector<2x24xf32>
    tpu.vector_store %arg14[%c0_51, %c0_52], %96 {strides = array<i32>} : memref<2x24xf32, #tpu.memory_space<vmem>>, vector<2x24xf32>,
    return
  }
}

</mosaic_0001>

<bundles_post_ra>
// kernel: tpu_custom_call.1
= control target key start
LH: loop header
LB: loop body
LE: loop exit
PB: predicated region body
PF: predicated region fallthrough
CT: control target
= control target key end

     0   :  { %s1284_s0 = inlined_call_operand.vmem [shape: s32[2,1], index: 0, kind: input, shape index: {}]   ;;  %s1285_s1 = inlined_call_operand.vmem [shape: f32[2,32], index: 1, kind: input, shape index: {}]   ;;  %s1286_s2 = inlined_call_operand.vmem [shape: f32[2,32], index: 2, kind: input, shape index: {}]   ;;  %s1287_s3 = inlined_call_operand.hbm [shape: f32[2,8,32], index: 3, kind: input, shape index: {}]   ;;  %s1288_s4 = inlined_call_operand.vmem [shape: f32[24,16], index: 4, kind: input, shape index: {}]   ;;  %s1289_s5 = inlined_call_operand.hbm [shape: f32[16,384], index: 5, kind: input, shape index: {}]   ;;  %s1290_s6 = inlined_call_operand.vmem [shape: f32[32,384], index: 6, kind: input, shape index: {}]   ;;  %s1291_s7 = inlined_call_operand.hbm [shape: f32[32,384], index: 7, kind: input, shape index: {}]   ;;  %s1292_s8 = inlined_call_operand.vmem [shape: f32[1,384], index: 8, kind: input, shape index: {}]   ;;  %s1293_s9 = inlined_call_operand.vmem [shape: f32[1,384], index: 9, kind: input, shape index: {}]   ;;  %s1294_s10 = inlined_call_operand.hbm [shape: f32[32,32], index: 10, kind: input, shape index: {}]   ;;  %s1295_s11 = inlined_call_operand.vmem [shape: f32[1,32], index: 11, kind: input, shape index: {}]   ;;  %s1296_s12 = inlined_call_operand.vmem [shape: f32[64,24], index: 12, kind: input, shape index: {}]   ;;  %s1297_s13 = inlined_call_operand.vmem [shape: f32[1,24], index: 13, kind: input, shape index: {}]   ;;  %s1298_s14 = inlined_call_operand.hbm [shape: f32[2,24], index: 14, kind: output, shape index: {0}]   ;;  %s1299_s15 = inlined_call_operand.hbm [shape: f32[2,32], index: 15, kind: output, shape index: {1}]   ;;  %s1300_s16 = inlined_call_operand.hbm [shape: f32[2,32], index: 16, kind: output, shape index: {2}]   ;;  %s1301_s17 = inlined_call_operand.hbm [shape: f32[2,8], index: 17, kind: output, shape index: {3}]  }
   0x1   :  { %1302 = sst [smem:[#allocation22_spill]] %s1284_s0 }
   0x2   :  { %1303 = sst [smem:[#allocation23_spill]] %s1285_s1 }
   0x3   :  { %23 = vsyncpa [#allocation3], 0 }
   0x4   :  { %24 = vsyncpa [#allocation6], 0 }
   0x5   :  { %25 = vsyncpa [#allocation9], 0 }
   0x6   :  { %26 = vsyncpa [#allocation4], 0 }
   0x7   :  { %27 = vsyncpa [#allocation12], 0  ;;  %s54_s26 = sshll.u32 %s1289_s5, 4  ;;  %s55_s26 = int_to_ptr.hbm [resolvable:$true] %s54_s26 }
   0x8   :  { %28 = vsyncpa [#allocation15], 0  ;;  %s1012_s27 = smov [#allocation5]   ;;  %s39_s30 = sshll.u32 %s1287_s3, 4  ;;  %s40_s30 = int_to_ptr.hbm [resolvable:$true] %s39_s30 }
   0x9   :  { %s56_s28 = sshll.u32 %s1012_s27, 4  ;;  %s1013_s18 = smov 384   ;;  %s57_s28 = int_to_ptr.vmem [resolvable:$true] %s56_s28 }
   0xa   :  { %s1014_s19 = smov 24   ;;  %s1015_s1 = smov [#allocation2]  }
   0xb   :  { %62 = dma.hbm_to_vmem [thread:$0]  %s55_s26, 768, %s57_s28, [#allocation6], %s1013_s18, %s1013_s18, %s1014_s19  }
   0xc   :  { %s41_s20 = sshll.u32 %s1015_s1, 4  ;;  %s1016_s21 = smov 128   ;;  %s42_s20 = int_to_ptr.vmem [resolvable:$true] %s41_s20 }
   0xd   :  { %s1017_s22 = smov 8   ;;  %s69_s24 = sshll.u32 %s1291_s7, 4  ;;  %s70_s24 = int_to_ptr.hbm [resolvable:$true] %s69_s24 }
   0xe   :  { %47 = dma.hbm_to_vmem [thread:$0]  %s40_s30, 256, %s42_s20, [#allocation3], %s1016_s21, %s1016_s21, %s1017_s22  }
   0xf   :  { %s1018_s25 = smov [#allocation7]   ;;  %s86_s0 = sshll.u32 %s1294_s10, 4  ;;  %s87_s0 = int_to_ptr.hbm [resolvable:$true] %s86_s0 }
  0x10   :  { %s71_s27 = sshll.u32 %s1018_s25, 4  ;;  %s1019_s26 = smov [#allocation8]   ;;  %s72_s27 = int_to_ptr.vmem [resolvable:$true] %s71_s27 }
  0x11   :  { %77 = dma.hbm_to_vmem [thread:$0]  %s70_s24, 1536, %s72_s27, [#allocation6], %s1013_s18, %s1013_s18, %s1014_s19  }
  0x12   :  { %s88_s28 = sshll.u32 %s1019_s26, 4  ;;  %s89_s28 = int_to_ptr.vmem [resolvable:$true] %s88_s28 }
  0x13   :  { %94 = dma.hbm_to_vmem [thread:$0]  %s87_s0, 512, %s89_s28, [#allocation9], %s1016_s21, %s1016_s21, %s1017_s22  }
  0x14   :  { %1000 = dma.done.wait [#allocation3], 256  }
  0x15   :  { %1001 = vsyncadd [#allocation3], 4294967040 }
  0x16   :  { %1002 = dma.done.wait [#allocation6], 2304  }
  0x17   :  { %1003 = vsyncadd [#allocation6], 4294964992 }
  0x18   :  { %1004 = dma.done.wait [#allocation9], 512  }
  0x19   :  { %1005 = vsyncadd [#allocation9], 4294966784  ;;  %v1020_v0 = vmov 0   ;;  %s1304_s1 = sld [smem:[#allocation22_spill]]  ;;  %v128_v2 = vld [vmem:[%s1288_s4 + $0x10] sm:$0xff]  ;;  %v127_v3 = vld [vmem:[%s1288_s4 + $0x8] sm:$0xff]  ;;  %v118_v27 = vlaneseq }
  0x1a   :  { %781 = vset.pattern.permute.xlu0 %v1020_v0  ;;  %782 = vset.pattern.permute.xlu2 %v1020_v0  ;;  %v126_v4 = vld [vmem:[%s1288_s4] sm:$0xff]  ;;  %v172_v5 = vld [vmem:[%s1290_s6 + $0x58] sm:$0xff]  ;;  %v170_v7 = vld [vmem:[%s1290_s6 + $0x48] sm:$0xff]  ;;  %s1305_s27 = sld [smem:[#allocation23_spill]]  ;;  %vm173_vm0 = vcmask 261120   ;;  %vm129_vm1 = vcmask 195584  }
  0x1b   :  { %783 = vset.pattern.permute.xlu1 %v1020_v0  ;;  %146 = vmatpush.msra.mxu0 %v128_v2  ;;  %v169_v6 = vld [vmem:[%s1290_s6 + $0x40] sm:$0xff]  ;;  %v171_v8 = vld [vmem:[%s1290_s6 + $0x50] sm:$0xff]  ;;  %v166_v10 = vld [vmem:[%s1290_s6 + $0x28] sm:$0xff]  ;;  %v1189_v28 = vand.u32 127, %v118_v27  ;;  %v1021_v30 = vmov 0.0   ;;  %vm237_vm3 = vcmask 130048  }
  0x1c   :  { %229 = vmatpush.msra.mxu3 %v172_v5  ;;  %189 = vmatpush.msra.mxu1 %v170_v7  ;;  %v167_v9 = vld [vmem:[%s1290_s6 + $0x30] sm:$0xff]  ;;  %v168_v11 = vld [vmem:[%s1290_s6 + $0x38] sm:$0xff]  ;;  %v165_v13 = vld [vmem:[%s1290_s6 + $0x20] sm:$0xff]  ;;  %vm442_vm12 = vcmask 254976   ;;  %vm512_vm13 = vcmask 1041409   ;;  %vm515_vm14 = vcmask 58368  }
  0x1d   :  { %147 = vmatpush.msra.mxu0 %v127_v3  ;;  %209 = vmatpush.msra.mxu2 %v171_v8  ;;  %v164_v12 = vld [vmem:[%s1290_s6 + $0x18] sm:$0xff]  ;;  %v163_v14 = vld [vmem:[%s1290_s6 + $0x10] sm:$0xff]  ;;  %v161_v15 = vld [vmem:[%s1290_s6] sm:$0xff]  ;;  %s703_s26 = sshll.u32 %s1299_s15, 4  ;;  %s714_s7 = sshll.u32 %s1300_s16, 4  ;;  %s704_s26 = int_to_ptr.hbm [resolvable:$true] %s703_s26  ;;  %s715_s7 = int_to_ptr.hbm [resolvable:$true] %s714_s7 }
  0x1e   :  { %230 = vmatpush.msra.mxu3 %v169_v6  ;;  %190 = vmatpush.msra.mxu1 %v167_v9  ;;  %v162_v17 = vld [vmem:[%s1290_s6 + $0x8] sm:$0xff]  ;;  %v155_v20 = vld [vmem:[#allocation5] sm:$0xff]  ;;  %v160_v23 = vld [vmem:[#allocation5 + $0x28] sm:$0xff]  ;;  %s1022_s6 = smov [#allocation11]   ;;  %s725_s15 = sshll.u32 %s1301_s17, 4  ;;  %s726_s15 = int_to_ptr.hbm [resolvable:$true] %s725_s15 }
  0x1f   :  { %v117_v1 = vld [vmem:[%s1304_s1] sm:$0x3]  ;;  %148 = vmatpush.msra.mxu0 %v126_v4  ;;  %210 = vmatpush.msra.mxu2 %v168_v11  ;;  %v158_v18 = vld [vmem:[#allocation5 + $0x18] sm:$0xff]  ;;  %v318_v21 = vld [vmem:[#allocation7 + $0x30] sm:$0xff]  ;;  %s701_s0 = sshll.u32 %s1022_s6, 4  ;;  %s1024_s10 = smov [#allocation14]   ;;  %s702_s0 = int_to_ptr.vmem [resolvable:$true] %s701_s0 }
  0x20   :  { %121 = vperm.xlu0 %781, %v117_v1   ;;  %231 = vmatpush.msra.mxu3 %v166_v10  ;;  %v153_v16 = vld [vmem:[%s1305_s27] sm:$0x3]  ;;  %v321_v19 = vld [vmem:[#allocation7 + $0x48] sm:$0xff]  ;;  %v159_v22 = vld [vmem:[#allocation5 + $0x20] sm:$0xff]  ;;  %s723_s18 = sshll.u32 %s1024_s10, 4  ;;  %s1025_s19 = smov [#allocation10]   ;;  %s724_s18 = int_to_ptr.vmem [resolvable:$true] %s723_s18 }
  0x21   :  { %191 = vmatpush.msra.mxu1 %v164_v12  ;;  %211 = vmatpush.msra.mxu2 %v165_v13  ;;  %v315_v24 = vld [vmem:[#allocation7 + $0x18] sm:$0xff]  ;;  %v312_v25 = vld [vmem:[#allocation7] sm:$0xff]  ;;  %v322_v34 = vld [vmem:[#allocation7 + $0x50] sm:$0xff]  ;;  %s690_s20 = sshll.u32 %s1025_s19, 4  ;;  %s692_s16 = sshll.u32 %s1298_s14, 4  ;;  %s691_s20 = int_to_ptr.vmem [resolvable:$true] %s690_s20  ;;  %s693_s16 = int_to_ptr.hbm [resolvable:$true] %s692_s16 }
  0x22   :  { %255 = vmatpush.msrb.mxu0 %v158_v18  ;;  %232 = vmatpush.msra.mxu3 %v163_v14  ;;  %v1185_v26 = vld [vmem:[%s1286_s2] sm:$0x3]  ;;  %v156_v32 = vld [vmem:[#allocation5 + $0x8] sm:$0xff]  ;;  %v313_v37 = vld [vmem:[#allocation7 + $0x8] sm:$0xff] }
  0x23   :  { %192 = vmatpush.msra.mxu1 %v161_v15  ;;  %755 = vmatmul.msk.f32.vlgmr.msra.gmra.mxu3 %vm173_vm0, %v153_v16  ;;  %v157_v33 = vld [vmem:[#allocation5 + $0x10] sm:$0xff]  ;;  %v319_v35 = vld [vmem:[#allocation7 + $0x38] sm:$0xff]  ;;  %v317_v40 = vld [vmem:[#allocation7 + $0x28] sm:$0xff] }
  0x24   :  { %212 = vmatpush.msra.mxu2 %v162_v17  ;;  %347 = vmatpush.msrb.mxu3 %v321_v19  ;;  %v316_v36 = vld [vmem:[#allocation7 + $0x20] sm:$0xff]  ;;  %v323_v38 = vld [vmem:[#allocation7 + $0x58] sm:$0xff]  ;;  %v314_v41 = vld [vmem:[#allocation7 + $0x10] sm:$0xff] }
  0x25   :  { %753 = vmatmul.msk.f32.vlgmr.msra.gmra.mxu1 %vm173_vm0, %v153_v16  ;;  %754 = vmatmul.msk.f32.vlgmr.msra.gmra.mxu2 %vm173_vm0, %v153_v16  ;;  %v320_v39 = vld [vmem:[#allocation7 + $0x40] sm:$0xff]  ;;  %v447_v1 = vld [vmem:[#allocation8 + $0x18] sm:$0xff]  ;;  %v446_v4 = vld [vmem:[#allocation8 + $0x10] sm:$0xff] }
  0x26   :  { %256 = vmatpush.msrb.mxu0 %v155_v20  ;;  %348 = vmatpush.msrb.mxu3 %v318_v21  ;;  %v324_v45 = vld [vmem:[%s1293_s9] sm:$0x7]  ;;  %v619_v2 = vld [vmem:[%s1296_s12 + $0x18] sm:$0xff]  ;;  %v618_v5 = vld [vmem:[%s1296_s12 + $0x10] sm:$0xff] }
  0x27   :  { %275 = vmatpush.msrb.mxu1 %v159_v22  ;;  %295 = vmatpush.msrb.mxu2 %v160_v23  ;;  %v1202_v46 = vld [vmem:[%s1292_s8] sm:$0x7]  ;;  %v326_v47 = vperm.slane %v324_v45, 0  ;;  %v327_v59 = vperm.slane %v324_v45, 1  ;;  %v445_v6 = vld [vmem:[#allocation8 + $0x8] sm:$0xff]  ;;  %v328_v17 = vperm.slane %v324_v45, 2 }
  0x28   :  { %349 = vmatpush.msrb.mxu3 %v315_v24  ;;  %v303_v49 = vperm.slane %v1202_v46, 0  ;;  %v304_v57 = vperm.slane %v1202_v46, 1  ;;  %v617_v7 = vld [vmem:[%s1296_s12 + $0x8] sm:$0xff]  ;;  %v444_v9 = vld [vmem:[#allocation8] sm:$0xff] }
  0x29   :  { %276 = vmatpush.msrb.mxu1 %v156_v32  ;;  %296 = vmatpush.msrb.mxu2 %v157_v33  ;;  %v616_v10 = vld [vmem:[%s1296_s12] sm:$0xff] }
  0x2a   :  { %350 = vmatpush.msrb.mxu3 %v312_v25  ;;  %v305_v25 = vperm.slane %v1202_v46, 2 }
  0x2b   :  { %759 = vmatmul.msk.f32.vlgmr.msrb.gmra.mxu3 %vm173_vm0, %v1185_v26  ;;  %387 = vmatpush.msra.mxu1 %v323_v38 }
  0x2c   :  { %463 = vmatpush.msra.mxu2 %v447_v1 }
  0x2d   :  { %388 = vmatpush.msra.mxu1 %v320_v39 }
  0x2e   :  { %464 = vmatpush.msra.mxu2 %v446_v4 }
  0x2f   :  { %389 = vmatpush.msra.mxu1 %v317_v40 }
  0x30   :  { %465 = vmatpush.msra.mxu2 %v445_v6 }
  0x31   :  { %390 = vmatpush.msra.mxu1 %v314_v41 }
  0x32   :  { %466 = vmatpush.msra.mxu2 %v444_v9 }
  0x92   :  { %v122_v29 = vpop.permute.xlu0 %121 }
  0x93   :  { %vm123_vm2 = vcmp.eq.s32.totalorder %v1189_v28, %v122_v29 }
  0x94   :  { %v751_v31 = vsel %vm123_vm2, 1.0, %v1021_v30 }
  0x95   :  { %752 = vmatmul.msk.f32.vlgmr.msra.gmra.mxu0 %vm129_vm1, %v751_v31 }
  0x96   :  { %367 = vmatpush.msra.mxu0 %v322_v34 }
  0x98   :  { %368 = vmatpush.msra.mxu0 %v319_v35 }
  0x9a   :  { %369 = vmatpush.msra.mxu0 %v316_v36 }
  0x9c   :  { %370 = vmatpush.msra.mxu0 %v313_v37 }
  0xa2   :  { %v194_v44 = vpop.f32.mrf.mxu1 }
  0xa6   :  { %v234_v43 = vpop.f32.mrf.mxu3 }
  0xa8   :  { %v214_v55 = vpop.f32.mrf.mxu2 }
  0xae   :  { %v352_v48 = vpop.f32.mrf.mxu3 }
  0xaf   :  { %v353_v52 = vadd.f32 %v352_v48, %v326_v47 }
 0x112   :  { %v150_v42 = vpop.f32.mrf.mxu0 }
 0x113   :  { %756 = vmatmul.msk.f32.vlgmr.msrb.gmra.mxu0 %vm237_vm3, %v150_v42  ;;  %757 = vmatmul.msk.f32.vlgmr.msrb.gmra.mxu1 %vm237_vm3, %v150_v42 }
 0x114   :  { %758 = vmatmul.msk.f32.vlgmr.msrb.gmra.mxu2 %vm237_vm3, %v150_v42  ;;  %658 = vmatpush.msrb.mxu0 %v619_v2 }
 0x116   :  { %659 = vmatpush.msrb.mxu0 %v618_v5 }
 0x118   :  { %660 = vmatpush.msrb.mxu0 %v617_v7 }
 0x11a   :  { %661 = vmatpush.msrb.mxu0 %v616_v10 }
 0x11b   :  { %760 = vmatmul.msk.f32.vlgmr.msra.gmra.mxu0 %vm173_vm0, %v1185_v26  ;;  %761 = vmatmul.msk.f32.vlgmr.msra.gmra.mxu1 %vm173_vm0, %v1185_v26 }
 0x190   :  { %v258_v50 = vpop.f32.mrf.mxu0  ;;  %v278_v53 = vpop.f32.mrf.mxu1 }
 0x191   :  { %v259_v51 = vadd.f32 %v258_v50, %v194_v44  ;;  %v279_v56 = vadd.f32 %v278_v53, %v214_v55 }
 0x193   :  { %v309_v54 = vadd.f32 %v303_v49, %v259_v51  ;;  %v310_v62 = vadd.f32 %v304_v57, %v279_v56  ;;  %v784_v49 = vld [vmem:[%s1295_s11] ss:$0 sm:$0xff] }
 0x195   :  { %v395_v58 = vadd.f32 %v353_v52, %v309_v54  ;;  %v1227_v54 = vld [vmem:[#allocation2] sm:$0xff] }
 0x197   :  { %v762_v60 = vmul.f32 -1.442695, %v395_v58  ;;  %v298_v16 = vpop.f32.mrf.mxu2 }
 0x198   :  { %v372_v61 = vpop.f32.mrf.mxu0  ;;  %v392_v19 = vpop.f32.mrf.mxu1  ;;  %v299_v24 = vadd.f32 %v298_v16, %v234_v43 }
 0x199   :  { %786 = vpow2.f32 %v762_v60  ;;  %v373_v63 = vadd.f32 %v372_v61, %v327_v59  ;;  %v393_v29 = vadd.f32 %v392_v19, %v328_v17  ;;  %v1231_v59 = vld [vmem:[#allocation2 + $0x8] sm:$0xff] }
 0x19a   :  { %v311_v34 = vadd.f32 %v305_v25, %v299_v24 }
 0x19b   :  { %v415_v0 = vadd.f32 %v373_v63, %v310_v62 }
 0x19d   :  { %v763_v3 = vmul.f32 -1.442695, %v415_v0 }
 0x19f   :  { %v787_v8 = vpop.eup %786  ;;  %788 = vpow2.f32 %v763_v3 }
 0x1a0   :  { %v399_v11 = vadd.f32 1.0, %v787_v8 }
 0x1a2   :  { %790 = vrcp.f32 %v399_v11  ;;  %v411_v20 = vand.u32 2147483648, %v399_v11  ;;  %v409_v22 = vand.u32 2147483647, %v399_v11  ;;  %vm405_vm5 = vweird.f32 %v399_v11 }
 0x1a4   :  { %v412_v31 = vor.u32 1.1754944e-38, %v411_v20  ;;  %vm410_vm7 = vcmp.eq.f32.partialorder %v409_v22, 8.507059e+37 }
 0x1a5   :  { %v789_v12 = vpop.eup %788 }
 0x1a6   :  { %v419_v13 = vadd.f32 1.0, %v789_v12 }
 0x1a8   :  { %v791_v14 = vpop.eup %790  ;;  %792 = vrcp.f32 %v419_v13  ;;  %v431_v37 = vand.u32 2147483648, %v419_v13  ;;  %v429_v39 = vand.u32 2147483647, %v419_v13  ;;  %vm425_vm9 = vweird.f32 %v419_v13 }
 0x1a9   :  { %v401_v15 = vmul.f32 %v791_v14, %v399_v11  ;;  %vm406_vm4 = vweird.f32 %v791_v14 }
 0x1aa   :  { %vm407_vm6 = vmor %vm405_vm5, %vm406_vm4  ;;  %v432_v42 = vor.u32 1.1754944e-38, %v431_v37  ;;  %vm430_vm11 = vcmp.eq.f32.partialorder %v429_v39, 8.507059e+37 }
 0x1ab   :  { %v402_v18 = vsub.f32 1.0, %v401_v15 }
 0x1ad   :  { %v403_v21 = vmul.f32 %v791_v14, %v402_v18 }
 0x1ae   :  { %v793_v23 = vpop.eup %792 }
 0x1af   :  { %v421_v27 = vmul.f32 %v793_v23, %v419_v13  ;;  %v404_v30 = vadd.f32 %v791_v14, %v403_v21  ;;  %vm426_vm8 = vweird.f32 %v793_v23 }
 0x1b0   :  { %vm427_vm10 = vmor %vm425_vm9, %vm426_vm8  ;;  %vm671_vm8 = vcmask 189440  }
 0x1b1   :  { %v422_v32 = vsub.f32 1.0, %v421_v27  ;;  %v408_v33 = vsel %vm407_vm6, %v791_v14, %v404_v30 }
 0x1b2   :  { %v413_v35 = vsel %vm410_vm7, %v412_v31, %v408_v33 }
 0x1b3   :  { %v423_v36 = vmul.f32 %v793_v23, %v422_v32  ;;  %v435_v38 = vmul.f32 %v413_v35, %v393_v29 }
 0x1b5   :  { %v424_v40 = vadd.f32 %v793_v23, %v423_v36  ;;  %v436_v41 = vadd.f32 %v435_v38, %v311_v34 }
 0x1b7   :  { %v428_v43 = vsel %vm427_vm10, %v793_v23, %v424_v40  ;;  %794 = vtanh.f32 %v436_v41 }
 0x1b8   :  { %v433_v44 = vsel %vm430_vm11, %v432_v42, %v428_v43 }
 0x1b9   :  { %v438_v45 = vsub.f32 1.0, %v433_v44  ;;  %v440_v48 = vmul.f32 %v433_v44, %v1185_v26 }
 0x1bd   :  { %v795_v46 = vpop.eup %794 }
 0x1be   :  { %v439_v47 = vmul.f32 %v795_v46, %v438_v45 }
 0x1c0   :  { %v441_v50 = vadd.f32 %v440_v48, %v439_v47 }
 0x1c2   :  { %764 = vmatmul.msk.f32.vlgmr.msra.gmra.mxu2 %vm173_vm0, %v441_v50  ;;  %766 = vmatmul.msk.f32.vlgmr.msrb.gmra.mxu0 %vm173_vm0, %v441_v50  ;;  %v475_v51 = vmul.f32 %v784_v49, %v441_v50  ;;  %443 = vst.msk [vmem:[#allocation13] sm:$0x3] %vm442_vm12, %v441_v50 }
 0x1c4   :  { %v476_v52 = vsel %vm442_vm12, %v475_v51, 0.0 }
 0x1c5   :  { %477 = vadd.xlane.f32.xlu0 %v476_v52 }
 0x238   :  { %v478_v62 = vpop.xlane.xlu0 %477 }
 0x239   :  { %v496_v63 = vperm.slane %v478_v62, 0  ;;  %v497_v2 = vperm.slane %v478_v62, 1 }
 0x245   :  { %v468_v53 = vpop.f32.mrf.mxu2 }
 0x246   :  { %v482_v26 = vrot.slane %v468_v53, 1  ;;  %v483_v55 = vperm.slane %v468_v53, 0  ;;  %v623_v53 = vld [vmem:[%s1296_s12 + $0x38] sm:$0xff] }
 0x247   :  { %638 = vmatpush.msra.mxu3 %v623_v53 }
 0x248   :  { %v487_v56 = vmul.f32 %v483_v55, %v1227_v54  ;;  %v484_v57 = vperm.slane %v482_v26, 0  ;;  %v622_v26 = vld [vmem:[%s1296_s12 + $0x30] sm:$0xff]  ;;  %v621_v55 = vld [vmem:[%s1296_s12 + $0x28] sm:$0xff] }
 0x249   :  { %639 = vmatpush.msra.mxu3 %v622_v26 }
 0x24a   :  { %v489_v58 = vsel %vm173_vm0, %v487_v56, 0.0  ;;  %v488_v60 = vmul.f32 %v484_v57, %v1231_v59  ;;  %v620_v56 = vld [vmem:[%s1296_s12 + $0x20] sm:$0xff] }
 0x24b   :  { %490 = vadd.xlane.f32.xlu1 %v489_v58  ;;  %640 = vmatpush.msra.mxu3 %v621_v55 }
 0x24c   :  { %v492_v61 = vsel %vm173_vm0, %v488_v60, 0.0 }
 0x24d   :  { %641 = vmatpush.msra.mxu3 %v620_v56 }
 0x253   :  { %493 = vadd.xlane.f32.xlu1 %v492_v61 }
 0x2be   :  { %v491_v0 = vpop.xlane.xlu1 %490 }
 0x2bf   :  { %v500_v1 = vadd.f32 %v496_v63, %v491_v0 }
 0x2c1   :  { %505 = vperm.xlu2 %782, %v500_v1  }
 0x2c6   :  { %v494_v3 = vpop.xlane.xlu1 %493 }
 0x2c7   :  { %v501_v4 = vadd.f32 %v497_v2, %v494_v3 }
 0x2c9   :  { %508 = vperm.xlu2 %782, %v501_v4  }
 0x31b   :  { %v506_v5 = vpop.permute.xlu2 %505 }
 0x31c   :  { %v510_v7 = vperm.slane %v506_v5, %v1189_v28 }
 0x323   :  { %v509_v6 = vpop.permute.xlu2 %508 }
 0x324   :  { %v511_v8 = vperm.slane %v509_v6, %v1189_v28 }
 0x326   :  { %v513_v9 = vsel %vm512_vm13, %v511_v8, %v510_v7 }
 0x327   :  { %v516_v10 = vsel %vm515_vm14, %v513_v9, -inf }
 0x328   :  { %517 = vmax.xlane.f32.xlu1 %v516_v10 }
 0x39b   :  { %v518_v11 = vpop.xlane.xlu1 %517 }
 0x39c   :  { %v520_v12 = vperm.slane %v518_v11, 0  ;;  %v521_v13 = vperm.slane %v518_v11, 1 }
 0x39e   :  { %v524_v14 = vsub.f32 %v500_v1, %v520_v12  ;;  %v525_v15 = vsub.f32 %v501_v4, %v521_v13  ;;  %v785_v13 = vld [vmem:[%s1297_s13] ss:$0 sm:$0xff]  ;;  %s1023_s13 = smov [#allocation13]  }
 0x39f   :  { %s712_s28 = sshll.u32 %s1023_s13, 4  ;;  %s713_s28 = int_to_ptr.vmem [resolvable:$true] %s712_s28 }
 0x3a0   :  { %v526_v16 = vmul.f32 1.442695, %v524_v14  ;;  %v528_v17 = vmul.f32 1.442695, %v525_v15  ;;  %v663_v14 = vpop.f32.mrf.mxu0 }
 0x3a2   :  { %796 = vpow2.f32 %v526_v16 }
 0x3a3   :  { %798 = vpow2.f32 %v528_v17 }
 0x3a8   :  { %v797_v18 = vpop.eup %796 }
 0x3a9   :  { %v799_v19 = vpop.eup %798  ;;  %533 = vperm.xlu2 %782, %v797_v18  }
 0x3aa   :  { %536 = vperm.xlu1 %783, %v799_v19  }
 0x403   :  { %v534_v20 = vpop.permute.xlu2 %533 }
 0x404   :  { %v538_v22 = vperm.slane %v534_v20, %v1189_v28 }
 0x41c   :  { %v537_v21 = vpop.permute.xlu1 %536 }
 0x41d   :  { %v539_v23 = vperm.slane %v537_v21, %v1189_v28 }
 0x41f   :  { %v540_v24 = vsel %vm512_vm13, %v539_v23, %v538_v22 }
 0x420   :  { %v542_v25 = vsel %vm515_vm14, %v540_v24, 0.0 }
 0x421   :  { %543 = vadd.xlane.f32.xlu2 %v542_v25 }
 0x494   :  { %v544_v27 = vpop.xlane.xlu2 %543 }
 0x495   :  { %v546_v29 = vperm.slane %v544_v27, 0  ;;  %v547_v30 = vperm.slane %v544_v27, 1 }
 0x497   :  { %800 = vrcp.f32 %v546_v29  ;;  %v561_v37 = vand.u32 2147483648, %v546_v29  ;;  %v576_v38 = vand.u32 2147483648, %v547_v30  ;;  %v559_v40 = vand.u32 2147483647, %v546_v29 }
 0x498   :  { %802 = vrcp.f32 %v547_v30  ;;  %v574_v42 = vand.u32 2147483647, %v547_v30  ;;  %vm555_vm2 = vweird.f32 %v546_v29  ;;  %vm570_vm3 = vweird.f32 %v547_v30 }
 0x499   :  { %v562_v45 = vor.u32 1.1754944e-38, %v561_v37  ;;  %v577_v46 = vor.u32 1.1754944e-38, %v576_v38  ;;  %vm560_vm6 = vcmp.eq.f32.partialorder %v559_v40, 8.507059e+37 }
 0x49a   :  { %vm575_vm7 = vcmp.eq.f32.partialorder %v574_v42, 8.507059e+37 }
 0x49d   :  { %v801_v31 = vpop.eup %800 }
 0x49e   :  { %v803_v32 = vpop.eup %802  ;;  %v551_v33 = vmul.f32 %v801_v31, %v546_v29  ;;  %vm556_vm15 = vweird.f32 %v801_v31 }
 0x49f   :  { %v566_v34 = vmul.f32 %v803_v32, %v547_v30  ;;  %vm571_vm1 = vweird.f32 %v803_v32  ;;  %vm557_vm4 = vmor %vm555_vm2, %vm556_vm15 }
 0x4a0   :  { %v552_v35 = vsub.f32 1.0, %v551_v33  ;;  %vm572_vm5 = vmor %vm570_vm3, %vm571_vm1 }
 0x4a1   :  { %v567_v36 = vsub.f32 1.0, %v566_v34 }
 0x4a2   :  { %v553_v39 = vmul.f32 %v801_v31, %v552_v35 }
 0x4a3   :  { %v568_v41 = vmul.f32 %v803_v32, %v567_v36 }
 0x4a4   :  { %v554_v43 = vadd.f32 %v801_v31, %v553_v39 }
 0x4a5   :  { %v569_v44 = vadd.f32 %v803_v32, %v568_v41 }
 0x4a6   :  { %v558_v47 = vsel %vm557_vm4, %v801_v31, %v554_v43 }
 0x4a7   :  { %v573_v48 = vsel %vm572_vm5, %v803_v32, %v569_v44  ;;  %v563_v49 = vsel %vm560_vm6, %v562_v45, %v558_v47 }
 0x4a8   :  { %v578_v50 = vsel %vm575_vm7, %v577_v46, %v573_v48  ;;  %v564_v51 = vmul.f32 %v797_v18, %v563_v49 }
 0x4a9   :  { %v579_v52 = vmul.f32 %v799_v19, %v578_v50 }
 0x4aa   :  { %583 = vperm.xlu1 %783, %v564_v51  }
 0x4ab   :  { %586 = vperm.xlu0 %781, %v579_v52  }
 0x51c   :  { %v584_v57 = vpop.permute.xlu1 %583 }
 0x51d   :  { %v587_v58 = vpop.permute.xlu0 %586  ;;  %v588_v60 = vperm.slane %v584_v57, %v1189_v28  ;;  %v595_v61 = vmul.f32 %v584_v57, %v1227_v54 }
 0x51e   :  { %v589_v62 = vperm.slane %v587_v58, %v1189_v28  ;;  %v596_v63 = vmul.f32 %v587_v58, %v1231_v59 }
 0x51f   :  { %v597_v0 = vsel %vm173_vm0, %v595_v61, 0.0 }
 0x520   :  { %v604_v1 = vsel %vm173_vm0, %v596_v63, 0.0  ;;  %v598_v2 = vrot.slane %v597_v0, 4  ;;  %v590_v3 = vsel %vm512_vm13, %v589_v62, %v588_v60 }
 0x521   :  { %v605_v4 = vrot.slane %v604_v1, 4  ;;  %592 = vst.msk [vmem:[#allocation14] sm:$0x3] %vm515_vm14, %v590_v3 }
 0x522   :  { %v599_v5 = vadd.f32 %v598_v2, %v597_v0  ;;  %728 = dma.vmem_to_hbm [thread:$0]  %s724_s18, 32, %s726_s15, [#allocation15]  }
 0x523   :  { %v606_v6 = vadd.f32 %v605_v4, %v604_v1 }
 0x524   :  { %v600_v7 = vrot.slane %v599_v5, 2 }
 0x525   :  { %v607_v8 = vrot.slane %v606_v6, 2 }
 0x526   :  { %v601_v9 = vadd.f32 %v600_v7, %v599_v5 }
 0x527   :  { %v608_v54 = vadd.f32 %v607_v8, %v606_v6 }
 0x528   :  { %v602_v10 = vrot.slane %v601_v9, 1 }
 0x529   :  { %v609_v28 = vrot.slane %v608_v54, 1 }
 0x52a   :  { %v603_v11 = vadd.f32 %v602_v10, %v601_v9 }
 0x52b   :  { %v610_v59 = vadd.f32 %v609_v28, %v608_v54 }
 0x52d   :  { %v613_v12 = vsel %vm512_vm13, %v610_v59, %v603_v11 }
 0x52e   :  { %765 = vmatmul.msk.f32.vlgmr.msra.gmra.mxu3 %vm173_vm0, %v613_v12  ;;  %615 = vst.msk [vmem:[#allocation11] sm:$0x3] %vm442_vm12, %v613_v12 }
 0x52f   :  { %706 = dma.vmem_to_hbm [thread:$0]  %s702_s0, 32, %s704_s26, [#allocation12]  }
 0x530   :  { %717 = dma.vmem_to_hbm [thread:$0]  %s713_s28, 32, %s715_s7, [#allocation12]  }
 0x5b1   :  { %v643_v15 = vpop.f32.mrf.mxu3 }
 0x5b2   :  { %v664_v16 = vadd.f32 %v663_v14, %v643_v15 }
 0x5b4   :  { %v670_v17 = vadd.f32 %v785_v13, %v664_v16 }
 0x5b6   :  { %v672_v18 = vsel %vm671_vm8, %v670_v17, -inf }
 0x5b7   :  { %673 = vmax.xlane.f32.xlu1 %v672_v18 }
 0x62a   :  { %v674_v19 = vpop.xlane.xlu1 %673 }
 0x62b   :  { %v675_v20 = vsub.f32 %v670_v17, %v674_v19 }
 0x62d   :  { %v676_v21 = vmul.f32 1.442695, %v675_v20 }
 0x62f   :  { %804 = vpow2.f32 %v676_v21 }
 0x635   :  { %v805_v22 = vpop.eup %804 }
 0x636   :  { %v678_v23 = vsel %vm671_vm8, %v805_v22, 0.0 }
 0x637   :  { %679 = vadd.xlane.f32.xlu2 %v678_v23 }
 0x6aa   :  { %v680_v24 = vpop.xlane.xlu2 %679 }
 0x6ab   :  { %806 = vlog2.f32 %v680_v24 }
 0x6b1   :  { %v807_v25 = vpop.eup %806 }
 0x6b2   :  { %v682_v27 = vmul.f32 0.6931472, %v807_v25 }
 0x6b4   :  { %v683_v29 = vsub.f32 %v675_v20, %v682_v27 }
 0x6b6   :  { %684 = vst.msk [vmem:[#allocation10] sm:$0x3] %vm671_vm8, %v683_v29 }
 0x6b7   :  { %695 = dma.vmem_to_hbm [thread:$0]  %s691_s20, 32, %s693_s16, [#allocation4]  }
 0x6b8   :  { %1006 = dma.done.wait [#allocation4], 32  }
 0x6b9   :  { %1007 = vsyncadd [#allocation4], 4294967264 }
 0x6ba   :  { %1008 = dma.done.wait [#allocation12], 64  }
 0x6bb   :  { %1009 = vsyncadd [#allocation12], 4294967232 }
 0x6bc   :  { %1010 = dma.done.wait [#allocation15], 32  }
 0x6bd   :  { %1011 = vsyncadd [#allocation15], 4294967264 }
 0x6be   :  { %745 = vsyncpa [#allocation3], 1 }
 0x6bf   :  { %746 = vsyncpa [#allocation6], 1 }
 0x6c0   :  { %747 = vsyncpa [#allocation9], 1 }
 0x6c1   :  { %748 = vsyncpa [#allocation4], 1 }
 0x6c2   :  { %749 = vsyncpa [#allocation12], 1 }
 0x6c3   :  { %750 = vsyncpa [#allocation15], 1 }

</bundles_post_ra>
